<compile_context>
chip_gen: v7x
topology: tpu7x:2x2x1
jax: 0.10.0
libtpu: 0.0.40
codegen_flags: <defaults>
</compile_context>

<pallas_src>
import numpy as np
import jax
import jax.numpy as jnp
from jax.experimental import pallas as pl
from jax.experimental.pallas import tpu as pltpu

_DEG2RAD = np.float32(np.pi / 180.0)
_EARTH_R = np.float32(6371.0)
_LANES = 512
_MAX_TILE_ROWS = 128          # (128, 512) f32 tile = 256 KiB per plane


def _round_up(x, m):
    return ((x + m - 1) // m) * m


def _asin_unit(x):
    """arcsin(x) for x in [0, 1].  A&S 4.4.46, |err| <= 2e-8 rad.

    Pure VALU FMAs plus one EUP sqrt -- no Newton iterations, no divide.
    """
    p = np.float32(-0.0012624911)
    p = p * x + np.float32(0.0066700901)
    p = p * x + np.float32(-0.0170881256)
    p = p * x + np.float32(0.0308918810)
    p = p * x + np.float32(-0.0501743046)
    p = p * x + np.float32(0.0889789874)
    p = p * x + np.float32(-0.2145988016)
    p = p * x + np.float32(1.5707963050)
    return np.float32(np.pi / 2) - jnp.sqrt(jnp.maximum(1.0 - x, 0.0)) * p


def _track_loss_kernel(pred_ref, true_ref, wm_ref, out_ref, acc_ref):
    # pred_ref/true_ref: (2, tile_rows, LANES)   [0]=lat, [1]=lon (degrees)
    # wm_ref:            (tile_rows, LANES)      mask * forecast-hour weight
    # out_ref:           (1, 1) per-core partial numerator
    # acc_ref:           (1, 1) f32 VMEM scratch accumulator
    j = pl.program_id(1)

    @pl.when(j == 0)
    def _():
        acc_ref[...] = jnp.zeros_like(acc_ref)

    pred_lat = pred_ref[0]
    pred_lon = pred_ref[1]
    true_lat = true_ref[0]
    true_lon = true_ref[1]

    # Haversine great-circle distance (km), elementwise over (tile_rows, LANES).
    dlat = (true_lat - pred_lat) * _DEG2RAD
    dlon = (true_lon - pred_lon) * _DEG2RAD
    sin_dlat2 = jnp.sin(dlat * 0.5)
    sin_dlon2 = jnp.sin(dlon * 0.5)
    a = (sin_dlat2 * sin_dlat2
         + jnp.cos(pred_lat * _DEG2RAD) * jnp.cos(true_lat * _DEG2RAD)
         * sin_dlon2 * sin_dlon2)
    a = jnp.clip(a, 0.0, 1.0)
    dist = (2.0 * _EARTH_R) * _asin_unit(jnp.sqrt(a))

    # Masked + weighted partial sum (padding lanes have wm == 0).
    acc_ref[...] += jnp.sum(dist * wm_ref[...], keepdims=True)

    @pl.when(j == pl.num_programs(1) - 1)
    def _():
        out_ref[...] = acc_ref[...]


def hurricane_track_loss(pred_track, true_track, mask=None,
                         use_weighted_loss=True, max_weight=5.0):
    """Pallas TPU implementation of HurricaneTrackLoss.forward."""
    pred_track = pred_track.astype(jnp.float32)
    true_track = true_track.astype(jnp.float32)
    B, T, _ = pred_track.shape
    N = B * T

    # --- glue: combined mask*weight plane + denominator (cheap XLA ops) ----
    if use_weighted_loss:
        w = jnp.linspace(1.0, max_weight, T, dtype=jnp.float32)[None, :]   # (1, T)
    else:
        w = jnp.ones((1, T), jnp.float32)
    if mask is None:
        wm = jnp.broadcast_to(w, (B, T)).astype(jnp.float32)
        den = jnp.float32(N)
    else:
        m = mask.astype(jnp.float32)
        wm = m * w
        den = jnp.sum(m)

    # --- single layout transform per track: (B,T,2) -> (2, N) --------------
    pred2 = pred_track.reshape(N, 2).T            # (2, N): row0=lat, row1=lon
    true2 = true_track.reshape(N, 2).T
    wm_flat = wm.reshape(N)

    # --- lane-dense tiling: pad N -> rows*LANES, rows split over the grid --
    rows = -(-N // _LANES)
    if rows <= _MAX_TILE_ROWS:
        ncores, steps, tile_rows = 1, 1, rows
    else:
        ncores = 2                                # v7x second TC / megacore
        per_core = -(-rows // ncores)
        tile_rows = min(_MAX_TILE_ROWS, _round_up(per_core, 8))
        steps = -(-per_core // tile_rows)
    rows_padded = ncores * steps * tile_rows
    P = rows_padded * _LANES
    pad = P - N

    pred3 = jnp.pad(pred2, ((0, 0), (0, pad))).reshape(2, rows_padded, _LANES)
    true3 = jnp.pad(true2, ((0, 0), (0, pad))).reshape(2, rows_padded, _LANES)
    wm3 = jnp.pad(wm_flat, (0, pad)).reshape(rows_padded, _LANES)

    track_spec = pl.BlockSpec((2, tile_rows, _LANES),
                              lambda i, j: (0, i * steps + j, 0))
    wm_spec = pl.BlockSpec((tile_rows, _LANES),
                           lambda i, j: (i * steps + j, 0))
    out_spec = pl.BlockSpec((1, 1), lambda i, j: (i, 0))

    partials = pl.pallas_call(
        _track_loss_kernel,
        out_shape=jax.ShapeDtypeStruct((ncores, 1), jnp.float32),
        grid=(ncores, steps),
        in_specs=[track_spec, track_spec, wm_spec],
        out_specs=out_spec,
        scratch_shapes=[pltpu.VMEM((1, 1), jnp.float32)],
        compiler_params=pltpu.CompilerParams(
            dimension_semantics=("parallel", "arbitrary")),
        cost_estimate=pl.CostEstimate(
            flops=40 * P, transcendentals=6 * P, bytes_accessed=5 * P * 4 + 8),
    )(pred3, true3, wm3)

    return jnp.sum(partials) / den


def _reference(pred_track, true_track, mask=None,
               use_weighted_loss=True, max_weight=5.0):
    """Pure-JAX port of the PyTorch forward (for verification)."""
    pred_lat, pred_lon = pred_track[..., 0], pred_track[..., 1]
    true_lat, true_lon = true_track[..., 0], true_track[..., 1]
    d2r = jnp.float32(np.pi / 180.0)
    dlat = (true_lat - pred_lat) * d2r
    dlon = (true_lon - pred_lon) * d2r
    a = (jnp.sin(dlat / 2) ** 2
         + jnp.cos(pred_lat * d2r) * jnp.cos(true_lat * d2r) * jnp.sin(dlon / 2) ** 2)
    c = 2.0 * jnp.arcsin(jnp.sqrt(jnp.clip(a, 0.0, 1.0)))
    dist = 6371.0 * c
    if mask is not None:
        dist = dist * mask
    if use_weighted_loss:
        T = dist.shape[1]
        w = jnp.linspace(1.0, max_weight, T, dtype=jnp.float32)[None, :]
        dist = dist * w
    if mask is not None:
        return dist.sum() / mask.sum()
    return dist.mean()


if __name__ == "__main__":
    key = jax.random.PRNGKey(0)

    def make_inputs(k, B, T, noise_scale=0.5):
        k1, k2, k3 = jax.random.split(k, 3)
        base_lat = jax.random.uniform(k1, (B, T), jnp.float32, -30.0, 30.0)
        base_lon = jax.random.uniform(k2, (B, T), jnp.float32, -60.0, 60.0)
        pred = jnp.stack([base_lat, base_lon], axis=-1)
        true = pred + jax.random.normal(k3, (B, T, 2), jnp.float32) * noise_scale
        return pred, true

    k_a, k_b, k_c = jax.random.split(key, 3)

    # 1) small masked + weighted case (matches module usage: batch=2, time=8)
    pred_a, true_a = make_inputs(k_a, 2, 8)
    mask_a = jnp.ones((2, 8), jnp.float32).at[1, -2:].set(0.0)
    loss_a = jax.block_until_ready(
        hurricane_track_loss(pred_a, true_a, mask_a, True, 5.0))
    ref_a = _reference(pred_a, true_a, mask_a, True, 5.0)
    np.testing.assert_allclose(np.asarray(loss_a), np.asarray(ref_a),
                               rtol=1e-3, atol=1e-3)

    # 2) unmasked, weighted (mean path)
    pred_b, true_b = make_inputs(k_b, 4, 16)
    loss_b = jax.block_until_ready(
        hurricane_track_loss(pred_b, true_b, None, True, 3.0))
    ref_b = _reference(pred_b, true_b, None, True, 3.0)
    np.testing.assert_allclose(np.asarray(loss_b), np.asarray(ref_b),
                               rtol=1e-3, atol=1e-3)

    # 3) larger case that exercises the multi-tile / 2-way parallel grid path
    pred_c, true_c = make_inputs(k_c, 96, 720, noise_scale=1.0)
    mask_c = (jax.random.uniform(key, (96, 720)) > 0.25).astype(jnp.float32)
    loss_c = jax.block_until_ready(
        hurricane_track_loss(pred_c, true_c, mask_c, True, 5.0))
    ref_c = _reference(pred_c, true_c, mask_c, True, 5.0)
    np.testing.assert_allclose(np.asarray(loss_c), np.asarray(ref_c),
                               rtol=1e-3, atol=1e-3)

    print("KERNEL_OK")
</pallas_src>

<mosaic_0001>
module attributes {stable_mosaic.version = 11 : i64} {
  func.func @_track_loss_kernel(%arg0: i32, %arg1: i32, %arg2: memref<2x1x512xf32, #tpu.memory_space<vmem>>, %arg3: memref<2x1x512xf32, #tpu.memory_space<vmem>>, %arg4: memref<1x512xf32, #tpu.memory_space<vmem>>, %arg5: memref<1x1xf32, #tpu.memory_space<vmem>>, %arg6: memref<1x1xf32, #tpu.memory_space<vmem>>) attributes {dimension_semantics = [#tpu.dimension_semantics<parallel>, #tpu.dimension_semantics<arbitrary>], iteration_bounds = array<i64: 1, 1>, scalar_prefetch = 0 : i64, scratch_operands = 1 : i64, tpu.core_type = #tpu.core_type<tc>, window_params = [{transform_indices = @transform_0, window_bounds = array<i64: 2, 1, 512>}, {transform_indices = @transform_1, window_bounds = array<i64: 2, 1, 512>}, {transform_indices = @transform_2, window_bounds = array<i64: 1, 512>}, {transform_indices = @transform_3, window_bounds = array<i64: 1, 1>}]} {
    %c0_i32 = arith.constant 0 : i32
    %0 = arith.cmpi eq, %arg1, %c0_i32 : i32
    %1 = arith.extui %0 : i1 to i32
    %c0_i32_0 = arith.constant 0 : i32
    %2 = arith.cmpi ne, %1, %c0_i32_0 : i32
    scf.if %2 {
      %cst_39 = arith.constant 0.000000e+00 : f32
      %84 = vector.broadcast %cst_39 : f32 to vector<1x1xf32>
      %c0_40 = arith.constant 0 : index
      %c0_41 = arith.constant 0 : index
      %85 = vector.load %arg6[%c0_40, %c0_41] : memref<1x1xf32, #tpu.memory_space<vmem>>, vector<1x1xf32>
      tpu.vector_store %arg6[%c0_40, %c0_41], %84 {strides = array<i32>} : memref<1x1xf32, #tpu.memory_space<vmem>>, vector<1x1xf32>,
    } else {
    }
    %c0 = arith.constant 0 : index
    %c0_1 = arith.constant 0 : index
    %c0_2 = arith.constant 0 : index
    %3 = vector.load %arg2[%c0, %c0_1, %c0_2] : memref<2x1x512xf32, #tpu.memory_space<vmem>>, vector<1x1x512xf32>
    %4 = vector.shape_cast %3 : vector<1x1x512xf32> to vector<1x512xf32>
    %c1 = arith.constant 1 : index
    %c0_3 = arith.constant 0 : index
    %c0_4 = arith.constant 0 : index
    %5 = vector.load %arg2[%c1, %c0_3, %c0_4] : memref<2x1x512xf32, #tpu.memory_space<vmem>>, vector<1x1x512xf32>
    %6 = vector.shape_cast %5 : vector<1x1x512xf32> to vector<1x512xf32>
    %c0_5 = arith.constant 0 : index
    %c0_6 = arith.constant 0 : index
    %c0_7 = arith.constant 0 : index
    %7 = vector.load %arg3[%c0_5, %c0_6, %c0_7] : memref<2x1x512xf32, #tpu.memory_space<vmem>>, vector<1x1x512xf32>
    %8 = vector.shape_cast %7 : vector<1x1x512xf32> to vector<1x512xf32>
    %c1_8 = arith.constant 1 : index
    %c0_9 = arith.constant 0 : index
    %c0_10 = arith.constant 0 : index
    %9 = vector.load %arg3[%c1_8, %c0_9, %c0_10] : memref<2x1x512xf32, #tpu.memory_space<vmem>>, vector<1x1x512xf32>
    %10 = vector.shape_cast %9 : vector<1x1x512xf32> to vector<1x512xf32>
    %11 = arith.subf %8, %4 : vector<1x512xf32>
    %cst = arith.constant 0.0174532924 : f32
    %12 = vector.broadcast %cst : f32 to vector<1x512xf32>
    %13 = arith.mulf %11, %12 : vector<1x512xf32>
    %14 = arith.subf %10, %6 : vector<1x512xf32>
    %cst_11 = arith.constant 0.0174532924 : f32
    %15 = vector.broadcast %cst_11 : f32 to vector<1x512xf32>
    %16 = arith.mulf %14, %15 : vector<1x512xf32>
    %cst_12 = arith.constant 5.000000e-01 : f32
    %17 = vector.broadcast %cst_12 : f32 to vector<1x512xf32>
    %18 = arith.mulf %13, %17 : vector<1x512xf32>
    %19 = math.sin %18 : vector<1x512xf32>
    %cst_13 = arith.constant 5.000000e-01 : f32
    %20 = vector.broadcast %cst_13 : f32 to vector<1x512xf32>
    %21 = arith.mulf %16, %20 : vector<1x512xf32>
    %22 = math.sin %21 : vector<1x512xf32>
    %23 = arith.mulf %19, %19 : vector<1x512xf32>
    %cst_14 = arith.constant 0.0174532924 : f32
    %24 = vector.broadcast %cst_14 : f32 to vector<1x512xf32>
    %25 = arith.mulf %4, %24 : vector<1x512xf32>
    %26 = math.cos %25 : vector<1x512xf32>
    %cst_15 = arith.constant 0.0174532924 : f32
    %27 = vector.broadcast %cst_15 : f32 to vector<1x512xf32>
    %28 = arith.mulf %8, %27 : vector<1x512xf32>
    %29 = math.cos %28 : vector<1x512xf32>
    %30 = arith.mulf %26, %29 : vector<1x512xf32>
    %31 = arith.mulf %30, %22 : vector<1x512xf32>
    %32 = arith.mulf %31, %22 : vector<1x512xf32>
    %33 = arith.addf %23, %32 : vector<1x512xf32>
    %cst_16 = arith.constant 0.000000e+00 : f32
    %cst_17 = arith.constant 1.000000e+00 : f32
    %34 = vector.broadcast %cst_16 : f32 to vector<1x512xf32>
    %35 = arith.maximumf %34, %33 : vector<1x512xf32>
    %36 = vector.broadcast %cst_17 : f32 to vector<1x512xf32>
    %37 = arith.minimumf %36, %35 : vector<1x512xf32>
    %38 = math.sqrt %37 : vector<1x512xf32>
    %cst_18 = arith.constant -0.0012624911 : f32
    %39 = vector.broadcast %cst_18 : f32 to vector<1x512xf32>
    %40 = arith.mulf %39, %38 : vector<1x512xf32>
    %cst_19 = arith.constant 6.670090e-03 : f32
    %41 = vector.broadcast %cst_19 : f32 to vector<1x512xf32>
    %42 = arith.addf %40, %41 : vector<1x512xf32>
    %43 = arith.mulf %42, %38 : vector<1x512xf32>
    %cst_20 = arith.constant -0.0170881264 : f32
    %44 = vector.broadcast %cst_20 : f32 to vector<1x512xf32>
    %45 = arith.addf %43, %44 : vector<1x512xf32>
    %46 = arith.mulf %45, %38 : vector<1x512xf32>
    %cst_21 = arith.constant 0.0308918804 : f32
    %47 = vector.broadcast %cst_21 : f32 to vector<1x512xf32>
    %48 = arith.addf %46, %47 : vector<1x512xf32>
    %49 = arith.mulf %48, %38 : vector<1x512xf32>
    %cst_22 = arith.constant -0.0501743034 : f32
    %50 = vector.broadcast %cst_22 : f32 to vector<1x512xf32>
    %51 = arith.addf %49, %50 : vector<1x512xf32>
    %52 = arith.mulf %51, %38 : vector<1x512xf32>
    %cst_23 = arith.constant 0.0889789909 : f32
    %53 = vector.broadcast %cst_23 : f32 to vector<1x512xf32>
    %54 = arith.addf %52, %53 : vector<1x512xf32>
    %55 = arith.mulf %54, %38 : vector<1x512xf32>
    %cst_24 = arith.constant -0.214598805 : f32
    %56 = vector.broadcast %cst_24 : f32 to vector<1x512xf32>
    %57 = arith.addf %55, %56 : vector<1x512xf32>
    %58 = arith.mulf %57, %38 : vector<1x512xf32>
    %cst_25 = arith.constant 1.57079625 : f32
    %59 = vector.broadcast %cst_25 : f32 to vector<1x512xf32>
    %60 = arith.addf %58, %59 : vector<1x512xf32>
    %cst_26 = arith.constant 1.000000e+00 : f32
    %61 = vector.broadcast %cst_26 : f32 to vector<1x512xf32>
    %62 = arith.subf %61, %38 : vector<1x512xf32>
    %cst_27 = arith.constant 0.000000e+00 : f32
    %63 = vector.broadcast %cst_27 : f32 to vector<1x512xf32>
    %64 = arith.maximumf %62, %63 : vector<1x512xf32>
    %65 = math.sqrt %64 : vector<1x512xf32>
    %66 = arith.mulf %65, %60 : vector<1x512xf32>
    %cst_28 = arith.constant 1.57079637 : f32
    %67 = vector.broadcast %cst_28 : f32 to vector<1x512xf32>
    %68 = arith.subf %67, %66 : vector<1x512xf32>
    %cst_29 = arith.constant 1.274200e+04 : f32
    %69 = vector.broadcast %cst_29 : f32 to vector<1x512xf32>
    %70 = arith.mulf %69, %68 : vector<1x512xf32>
    %c0_30 = arith.constant 0 : index
    %c0_31 = arith.constant 0 : index
    %71 = vector.load %arg6[%c0_30, %c0_31] : memref<1x1xf32, #tpu.memory_space<vmem>>, vector<1x1xf32>
    %c0_32 = arith.constant 0 : index
    %c0_33 = arith.constant 0 : index
    %72 = vector.load %arg4[%c0_32, %c0_33] : memref<1x512xf32, #tpu.memory_space<vmem>>, vector<1x512xf32>
    %73 = arith.mulf %70, %72 : vector<1x512xf32>
    %74 = vector.shape_cast %73 : vector<1x512xf32> to vector<1x1x512xf32>
    %cst_34 = arith.constant dense<0.000000e+00> : vector<1xf32>
    %75 = vector.multi_reduction <add>, %74, %cst_34 [1, 2] : vector<1x1x512xf32> to vector<1xf32>
    %76 = vector.shape_cast %75 : vector<1xf32> to vector<1x1x1xf32>
    %77 = vector.extract %76[0, 0, 0] : f32 from vector<1x1x1xf32>
    %78 = vector.broadcast %77 : f32 to vector<1x1xf32>
    %79 = arith.addf %71, %78 : vector<1x1xf32>
    %c0_35 = arith.constant 0 : index
    %c0_36 = arith.constant 0 : index
    %80 = vector.load %arg6[%c0_35, %c0_36] : memref<1x1xf32, #tpu.memory_space<vmem>>, vector<1x1xf32>
    tpu.vector_store %arg6[%c0_35, %c0_36], %79 {strides = array<i32>} : memref<1x1xf32, #tpu.memory_space<vmem>>, vector<1x1xf32>,
    %c0_i32_37 = arith.constant 0 : i32
    %81 = arith.cmpi eq, %arg1, %c0_i32_37 : i32
    %82 = arith.extui %81 : i1 to i32
    %c0_i32_38 = arith.constant 0 : i32
    %83 = arith.cmpi ne, %82, %c0_i32_38 : i32
    scf.if %83 {
      %c0_39 = arith.constant 0 : index
      %c0_40 = arith.constant 0 : index
      %84 = vector.load %arg6[%c0_39, %c0_40] : memref<1x1xf32, #tpu.memory_space<vmem>>, vector<1x1xf32>
      %c0_41 = arith.constant 0 : index
      %c0_42 = arith.constant 0 : index
      %85 = vector.load %arg5[%c0_41, %c0_42] : memref<1x1xf32, #tpu.memory_space<vmem>>, vector<1x1xf32>
      tpu.vector_store %arg5[%c0_41, %c0_42], %84 {strides = array<i32>} : memref<1x1xf32, #tpu.memory_space<vmem>>, vector<1x1xf32>,
    } else {
    }
    return
  }
  func.func @transform_0(%arg0: i32, %arg1: i32) -> (i32, i32, i32) {
    %c1_i32 = arith.constant 1 : i32
    %0 = arith.muli %arg0, %c1_i32 : i32
    %1 = arith.addi %0, %arg1 : i32
    %c0_i32 = arith.constant 0 : i32
    %c0_i32_0 = arith.constant 0 : i32
    %c0_i32_1 = arith.constant 0 : i32
    return %c0_i32, %1, %c0_i32_0 : i32, i32, i32
  }
  func.func @transform_1(%arg0: i32, %arg1: i32) -> (i32, i32, i32) {
    %c1_i32 = arith.constant 1 : i32
    %0 = arith.muli %arg0, %c1_i32 : i32
    %1 = arith.addi %0, %arg1 : i32
    %c0_i32 = arith.constant 0 : i32
    %c0_i32_0 = arith.constant 0 : i32
    %c0_i32_1 = arith.constant 0 : i32
    return %c0_i32, %1, %c0_i32_0 : i32, i32, i32
  }
  func.func @transform_2(%arg0: i32, %arg1: i32) -> (i32, i32) {
    %c1_i32 = arith.constant 1 : i32
    %0 = arith.muli %arg0, %c1_i32 : i32
    %1 = arith.addi %0, %arg1 : i32
    %c0_i32 = arith.constant 0 : i32
    %c0_i32_0 = arith.constant 0 : i32
    return %1, %c0_i32 : i32, i32
  }
  func.func @transform_3(%arg0: i32, %arg1: i32) -> (i32, i32) {
    %c0_i32 = arith.constant 0 : i32
    %c0_i32_0 = arith.constant 0 : i32
    return %arg0, %c0_i32 : i32, i32
  }
}

</mosaic_0001>

<bundles_post_ra>
// kernel: tpu_custom_call.1
= control target key start
LH: loop header
LB: loop body
LE: loop exit
PB: predicated region body
PF: predicated region fallthrough
CT: control target
= control target key end

     0   :  { %8 = vsyncpa [#allocation4], 0  ;;  %s1115_s0 = inlined_call_operand.hbm [shape: f32[2,1,512], index: 0, kind: input, shape index: {}]   ;;  %s1116_s1 = inlined_call_operand.hbm [shape: f32[2,1,512], index: 1, kind: input, shape index: {}]   ;;  %s1117_s2 = inlined_call_operand.vmem [shape: f32[1,512], index: 2, kind: input, shape index: {}]   ;;  %s1118_s3 = inlined_call_operand.hbm [shape: f32[1,1], index: 3, kind: output, shape index: {}]  }
   0x1   :  { %9 = vsyncpa [#allocation7], 0 }
   0x2   :  { %10 = vsyncpa [#allocation5], 0  ;;  %s754_s12 = smov [#allocation3]   ;;  %s682_s16 = scalar_lea.hbm %s1115_s0, 128 }
   0x3   :  { %s20_s13 = sshll.u32 %s754_s12, 4  ;;  %p683_p0 = scmp.ne.s32.totalorder %s1115_s0, %s682_s16  ;;  %s21_s13 = int_to_ptr.vmem [resolvable:$true] %s20_s13 }
   0x4   :  { %p686_p1 = scmp.lt.u32.totalorder %s682_s16, %s1115_s0 }
   0x6   :  { %p688_p2 = pnand %p686_p1, %p683_p0 }
   0x8   :  { %691 = shalt.err (!%p688_p2)
}
   0x9   :  { %s692_s21 = scalar_lea.vmem %s21_s13, 128  ;;  %p697_p4 = scmp.lt.s32.totalorder %s21_s13, %s21_s13 }
   0xa   :  { %p693_p3 = scmp.ne.s32.totalorder %s21_s13, %s692_s21  ;;  %p698_p5 = scmp.lt.s32.totalorder %s692_s21, %s692_s21 }
   0xc   :  { %p699_p6 = por %p698_p5, %p697_p4 }
   0xe   :  { %p700_p7 = pnand %p699_p6, %p693_p3 }
  0x10   :  { %703 = shalt.err (!%p700_p7)
}
  0x11   :  { %s755_s22 = smov 64   ;;  %s756_s23 = smov 4  }
  0x12   :  { %26 = dma.hbm_to_vmem [thread:$0]  %s1115_s0, 128, %s21_s13, [#allocation4], %s755_s22, %s755_s22, %s756_s23  }
  0x13   :  { %s757_s26 = smov [#allocation6]   ;;  %s704_s30 = scalar_lea.hbm %s1116_s1, 128 }
  0x14   :  { %s36_s27 = sshll.u32 %s757_s26, 4  ;;  %p705_p8 = scmp.ne.s32.totalorder %s1116_s1, %s704_s30  ;;  %s37_s27 = int_to_ptr.vmem [resolvable:$true] %s36_s27 }
  0x15   :  { %p708_p9 = scmp.lt.u32.totalorder %s704_s30, %s1116_s1 }
  0x17   :  { %p710_p10 = pnand %p708_p9, %p705_p8 }
  0x19   :  { %713 = shalt.err (!%p710_p10)
}
  0x1a   :  { %s714_s8 = scalar_lea.vmem %s37_s27, 128  ;;  %p719_p12 = scmp.lt.s32.totalorder %s37_s27, %s37_s27 }
  0x1b   :  { %p715_p11 = scmp.ne.s32.totalorder %s37_s27, %s714_s8  ;;  %p720_p13 = scmp.lt.s32.totalorder %s714_s8, %s714_s8 }
  0x1d   :  { %p721_p0 = por %p720_p13, %p719_p12 }
  0x1f   :  { %p722_p1 = pnand %p721_p0, %p715_p11 }
  0x21   :  { %725 = shalt.err (!%p722_p1)
}
  0x22   :  { %42 = dma.hbm_to_vmem [thread:$0]  %s1116_s1, 128, %s37_s27, [#allocation7], %s755_s22, %s755_s22, %s756_s23  }
  0x23   :  { %748 = dma.done.wait [#allocation4], 128  }
  0x24   :  { %749 = vsyncadd [#allocation4], 4294967168 }
  0x25   :  { %750 = dma.done.wait [#allocation7], 128  }
  0x26   :  { %751 = vsyncadd [#allocation7], 4294967168  ;;  %vm74_vm0 = vcmask 0   ;;  %v758_v0 = vmov 0.0   ;;  %v76_v1 = vld [vmem:[#allocation3] sm:$0xf] }
  0x27   :  { %75 = vst.msk [vmem:[#allocation2] sm:$0x1] %vm74_vm0, %v758_v0  ;;  %v78_v2 = vld [vmem:[#allocation3 + $0x4] sm:$0xf]  ;;  %v79_v3 = vld [vmem:[#allocation6] sm:$0xf] }
  0x28   :  { %v81_v4 = vld [vmem:[#allocation6 + $0x4] sm:$0xf]  ;;  %v82_v5 = vsub.f32 %v79_v3, %v76_v1  ;;  %v811_v6 = vmul.f32 0.017453292, %v76_v1  ;;  %v832_v34 = vmul.f32 0.017453292, %v79_v3 }
  0x29   :  { %v84_v7 = vsub.f32 %v81_v4, %v78_v2  ;;  %v759_v44 = vmov 683565275   ;;  %v760_v46 = vmov 2475754826   ;;  %v761_v48 = vmov 2131351028  }
  0x2a   :  { %v83_v8 = vmul.f32 0.017453292, %v82_v5  ;;  %v301_v9 = vand.u32 2139095040, %v811_v6  ;;  %v298_v27 = vand.u32 2147483647, %v811_v6  ;;  %s765_s11 = smov [#allocation8]  }
  0x2b   :  { %v85_v10 = vmul.f32 0.017453292, %v84_v7  ;;  %v762_v50 = vmov 2102212464   ;;  %v763_v52 = vmov 920167782  }
  0x2c   :  { %v814_v11 = vmul.f32 0.5, %v83_v8  ;;  %v302_v12 = vshrl.u32 %v301_v9, 23  ;;  %v836_v38 = vand.u32 8388607, %v298_v27  ;;  %v764_v60 = vmov 1326507024  }
  0x2d   :  { %v816_v13 = vmul.f32 0.5, %v85_v10  ;;  %s600_s12 = sshll.u32 %s765_s11, 4  ;;  %s601_s12 = int_to_ptr.vmem [resolvable:$true] %s600_s12 }
  0x2e   :  { %v87_v14 = vand.u32 2147483647, %v814_v11  ;;  %v90_v15 = vand.u32 2139095040, %v814_v11  ;;  %v624_v19 = vadd.s32 4294967169, %v302_v12  ;;  %s726_s13 = scalar_lea.vmem %s601_s12, 16  ;;  %s730_s14 = scalar_lea.vmem %s601_s12, 32 }
  0x2f   :  { %v192_v16 = vand.u32 2147483647, %v816_v13  ;;  %v195_v17 = vand.u32 2139095040, %v816_v13  ;;  %p727_p2 = scmp.ne.s32.totalorder %s601_s12, %s726_s13  ;;  %p731_p3 = scmp.lt.s32.totalorder %s601_s12, %s601_s12 }
  0x30   :  { %v91_v18 = vshrl.u32 %v90_v15, 23  ;;  %v94_v20 = vand.u32 8388607, %v87_v14  ;;  %v308_v24 = vadd.s32 1, %v624_v19  ;;  %p732_p4 = scmp.lt.s32.totalorder %s730_s14, %s726_s13 }
  0x31   :  { %v196_v21 = vshrl.u32 %v195_v17, 23  ;;  %v199_v22 = vand.u32 8388607, %v192_v16 }
  0x32   :  { %v616_v23 = vadd.s32 4294967169, %v91_v18  ;;  %vm309_vm1 = vcmp.gt.s32.totalorder %v308_v24, 0  ;;  %v95_v28 = vor.u32 8388608, %v94_v20  ;;  %p733_p5 = por %p732_p4, %p731_p3 }
  0x33   :  { %v620_v25 = vadd.s32 4294967169, %v196_v21  ;;  %v200_v29 = vor.u32 8388608, %v199_v22  ;;  %v827_v31 = vsel %vm309_vm1, %v308_v24, 0 }
  0x34   :  { %v97_v26 = vadd.s32 1, %v616_v23  ;;  %v830_v32 = vand.u32 31, %v827_v31  ;;  %v838_v39 = vshll.u32 %v95_v28, 8  ;;  %p734_p6 = pnand %p733_p5, %p727_p2 }
  0x35   :  { %v202_v30 = vadd.s32 1, %v620_v25  ;;  %v840_v41 = vshll.u32 %v200_v29, 8 }
  0x36   :  { %vm98_vm2 = vcmp.gt.s32.totalorder %v97_v26, 0  ;;  %v843_v42 = vsub.s32 32, %v830_v32 }
  0x37   :  { %v99_v33 = vsel %vm98_vm2, %v97_v26, 0  ;;  %vm203_vm3 = vcmp.gt.s32.totalorder %v202_v30, 0 }
  0x38   :  { %v100_v35 = vshrl.u32 %v99_v33, 5  ;;  %v101_v36 = vand.u32 31, %v99_v33  ;;  %v204_v37 = vsel %vm203_vm3, %v202_v30, 0 }
  0x39   :  { %v206_v40 = vand.u32 31, %v204_v37  ;;  %v850_v54 = vshrl.u32 %v204_v37, 5 }
  0x3a   :  { %v102_v43 = vsub.s32 32, %v101_v36  ;;  %v104_v45 = vshll.u32 %v759_v44, %v101_v36  ;;  %v107_v47 = vshll.u32 %v760_v46, %v101_v36  ;;  %v110_v49 = vshll.u32 %v761_v48, %v101_v36 }
  0x3b   :  { %v113_v51 = vshll.u32 %v762_v50, %v101_v36  ;;  %v116_v53 = vshll.u32 %v763_v52, %v101_v36  ;;  %vm119_vm4 = vcmp.lt.s32.totalorder %v100_v35, 1  ;;  %vm120_vm5 = vcmp.lt.s32.totalorder %v100_v35, 2 }
  0x3c   :  { %v103_v55 = vshrl.u32 %v759_v44, %v102_v43  ;;  %v105_v56 = vshrl.u32 %v760_v46, %v102_v43  ;;  %v108_v57 = vshrl.u32 %v761_v48, %v102_v43  ;;  %v111_v58 = vshrl.u32 %v762_v50, %v102_v43 }
  0x3d   :  { %v114_v59 = vshrl.u32 %v763_v52, %v102_v43  ;;  %v117_v61 = vshrl.u32 %v764_v60, %v102_v43  ;;  %vm122_vm6 = vcmp.lt.s32.totalorder %v100_v35, 4  ;;  %v207_v1 = vsub.s32 32, %v206_v40 }
  0x3e   :  { %v106_v62 = vor.u32 %v105_v56, %v104_v45  ;;  %v109_v63 = vor.u32 %v108_v57, %v107_v47  ;;  %v112_v0 = vor.u32 %v111_v58, %v110_v49  ;;  %vm121_vm7 = vcmp.lt.s32.totalorder %v100_v35, 3 }
  0x3f   :  { %v115_v2 = vor.u32 %v114_v59, %v113_v51  ;;  %v118_v3 = vor.u32 %v117_v61, %v116_v53  ;;  %v209_v4 = vshll.u32 %v759_v44, %v206_v40  ;;  %v212_v17 = vshll.u32 %v760_v46, %v206_v40 }
  0x40   :  { %v123_v5 = vsel %vm119_vm4, %v103_v55, %v106_v62  ;;  %v124_v7 = vsel %vm122_vm6, %v112_v0, 2102212464  ;;  %v127_v8 = vsel %vm119_vm4, %v106_v62, %v109_v63  ;;  %v131_v9 = vsel %vm119_vm4, %v109_v63, %v112_v0 }
  0x41   :  { %v125_v10 = vsel %vm121_vm7, %v109_v63, %v124_v7  ;;  %v128_v12 = vsel %vm122_vm6, %v115_v2, 920167782  ;;  %v132_v15 = vsel %vm122_vm6, %v118_v3, 1326507024  ;;  %v208_v20 = vshrl.u32 %v759_v44, %v207_v1 }
  0x42   :  { %v129_v18 = vsel %vm121_vm7, %v112_v0, %v128_v12  ;;  %v133_v19 = vsel %vm121_vm7, %v115_v2, %v132_v15  ;;  %v210_v21 = vshrl.u32 %v760_v46, %v207_v1  ;;  %v126_v22 = vsel %vm120_vm5, %v123_v5, %v125_v10 }
  0x43   :  { %v130_v23 = vsel %vm120_vm5, %v127_v8, %v129_v18  ;;  %v134_v24 = vsel %vm120_vm5, %v131_v9, %v133_v19  ;;  %v213_v25 = vshrl.u32 %v761_v48, %v207_v1  ;;  %v215_v37 = vshll.u32 %v761_v48, %v206_v40 }
  0x44   :  { %v870_v26 = vmul.u32.u64.low %v838_v39, %v134_v24  ;;  %v871_v28 = vmul.u32.u64.high %v838_v39, %v134_v24, %v870_v26  ;;  %v874_v29 = vmul.u32.u64.low %v838_v39, %v130_v23  ;;  %v875_v30 = vmul.u32.u64.high %v838_v39, %v130_v23, %v874_v29 }
  0x45   :  { %v211_v33 = vor.u32 %v210_v21, %v209_v4  ;;  %v214_v36 = vor.u32 %v213_v25, %v212_v17  ;;  %v216_v43 = vshrl.u32 %v762_v50, %v207_v1  ;;  %v218_v35 = vshll.u32 %v762_v50, %v206_v40 }
  0x46   :  { %v219_v45 = vshrl.u32 %v763_v52, %v207_v1  ;;  %v221_v47 = vshll.u32 %v763_v52, %v206_v40  ;;  %v222_v49 = vshrl.u32 %v764_v60, %v207_v1  ;;  %v142_v51 = vmul.u32 %v838_v39, %v126_v22 }
  0x47   :  { %v217_v53 = vor.u32 %v216_v43, %v215_v37  ;;  %vm224_vm8 = vcmp.lt.s32.totalorder %v850_v54, 1  ;;  %vm225_vm9 = vcmp.lt.s32.totalorder %v850_v54, 2  ;;  %vm144_vm10 = vc.u32 %v871_v28, %v874_v29 }
  0x48   :  { %v145_v55 = vadd.s32 1, %v875_v30  ;;  %v220_v56 = vor.u32 %v219_v45, %v218_v35  ;;  %vm226_vm11 = vcmp.lt.s32.totalorder %v850_v54, 3  ;;  %v223_v57 = vor.u32 %v222_v49, %v221_v47 }
  0x49   :  { %vm227_vm12 = vcmp.lt.s32.totalorder %v850_v54, 4  ;;  %v228_v40 = vsel %vm224_vm8, %v208_v20, %v211_v33  ;;  %v232_v58 = vsel %vm224_vm8, %v211_v33, %v214_v36  ;;  %v236_v62 = vsel %vm224_vm8, %v214_v36, %v217_v53 }
  0x4a   :  { %v146_v39 = vsel %vm144_vm10, %v145_v55, %v875_v30  ;;  %v229_v59 = vsel %vm227_vm12, %v217_v53, 2102212464  ;;  %v233_v61 = vsel %vm227_vm12, %v220_v56, 920167782  ;;  %v237_v2 = vsel %vm227_vm12, %v223_v57, 1326507024 }
  0x4b   :  { %v147_v63 = vadd.s32 %v146_v39, %v142_v51  ;;  %v230_v0 = vsel %vm226_vm11, %v214_v36, %v229_v59  ;;  %v234_v1 = vsel %vm226_vm11, %v217_v53, %v233_v61  ;;  %v238_v5 = vsel %vm226_vm11, %v220_v56, %v237_v2 }
  0x4c   :  { %v231_v3 = vsel %vm225_vm9, %v228_v40, %v230_v0  ;;  %v235_v4 = vsel %vm225_vm9, %v232_v58, %v234_v1  ;;  %v405_v7 = vand.u32 2139095040, %v832_v34  ;;  %v239_v9 = vsel %vm225_vm9, %v236_v62, %v238_v5 }
  0x4d   :  { %v148_v8 = vadd.s32 536870912, %v147_v63  ;;  %v901_v10 = vmul.u32.u64.low %v840_v41, %v235_v4  ;;  %v902_v12 = vmul.u32.u64.high %v840_v41, %v235_v4, %v901_v10  ;;  %v315_v18 = vshll.u32 %v759_v44, %v830_v32 }
  0x4e   :  { %v906_v15 = vmul.u32.u64.low %v840_v41, %v239_v9  ;;  %v907_v17 = vmul.u32.u64.high %v840_v41, %v239_v9, %v906_v15  ;;  %v316_v19 = vshrl.u32 %v760_v46, %v843_v42  ;;  %v247_v20 = vmul.u32 %v840_v41, %v231_v3 }
  0x4f   :  { %v311_v54 = vshrl.u32 %v827_v31, 5  ;;  %v318_v21 = vshll.u32 %v760_v46, %v830_v32  ;;  %v319_v22 = vshrl.u32 %v761_v48, %v843_v42  ;;  %v321_v23 = vshll.u32 %v761_v48, %v830_v32 }
  0x50   :  { %v322_v24 = vshrl.u32 %v762_v50, %v843_v42  ;;  %v324_v25 = vshll.u32 %v762_v50, %v830_v32  ;;  %v325_v41 = vshrl.u32 %v763_v52, %v843_v42  ;;  %v927_v26 = vshrl.u32 %v148_v8, 30 }
  0x51   :  { %v250_v31 = vadd.s32 1, %v902_v12  ;;  %v406_v30 = vshrl.u32 %v405_v7, 23  ;;  %vm249_vm13 = vc.u32 %v907_v17, %v901_v10  ;;  %v306_v33 = vor.u32 8388608, %v836_v38 }
  0x52   :  { %v317_v36 = vor.u32 %v316_v19, %v315_v18  ;;  %v327_v37 = vshll.u32 %v763_v52, %v830_v32  ;;  %v320_v35 = vor.u32 %v319_v22, %v318_v21  ;;  %v326_v45 = vor.u32 %v325_v41, %v324_v25 }
  0x53   :  { %v251_v43 = vsel %vm249_vm13, %v250_v31, %v902_v12  ;;  %v328_v47 = vshrl.u32 %v764_v60, %v843_v42  ;;  %v323_v51 = vor.u32 %v322_v24, %v321_v23  ;;  %vm330_vm14 = vcmp.lt.s32.totalorder %v311_v54, 1 }
  0x54   :  { %v252_v49 = vadd.s32 %v251_v43, %v247_v20  ;;  %v150_v53 = vshll.u32 %v927_v26, 30  ;;  %vm332_vm15 = vcmp.lt.s32.totalorder %v311_v54, 3  ;;  %v628_v55 = vadd.s32 4294967169, %v406_v30 }
  0x55   :  { %vm333_vm1 = vcmp.lt.s32.totalorder %v311_v54, 4  ;;  %v346_v38 = vshll.u32 %v306_v33, 8  ;;  %v329_v57 = vor.u32 %v328_v47, %v327_v37  ;;  %vm331_vm2 = vcmp.lt.s32.totalorder %v311_v54, 2 }
  0x56   :  { %v253_v56 = vadd.s32 536870912, %v252_v49  ;;  %v338_v32 = vsel %vm330_vm14, %v317_v36, %v320_v35  ;;  %v339_v40 = vsel %vm333_vm1, %v326_v45, 920167782  ;;  %v314_v39 = vshrl.u32 %v759_v44, %v843_v42 }
  0x57   :  { %v340_v59 = vsel %vm332_vm15, %v323_v51, %v339_v40  ;;  %v945_v61 = vsub.s32 %v147_v63, %v150_v53  ;;  %v335_v62 = vsel %vm333_vm1, %v323_v51, 2102212464  ;;  %v412_v0 = vadd.s32 1, %v628_v55 }
  0x58   :  { %v940_v58 = vshrl.u32 %v253_v56, 30  ;;  %v341_v1 = vsel %vm331_vm2, %v338_v32, %v340_v59  ;;  %v342_v2 = vsel %vm330_vm14, %v320_v35, %v323_v51  ;;  %v343_v4 = vsel %vm333_vm1, %v329_v57, 1326507024 }
  0x59   :  { %v950_v5 = vmul.u32.u64.low %v346_v38, %v341_v1  ;;  %v951_v7 = vmul.u32.u64.high %v346_v38, %v341_v1, %v950_v5  ;;  %v334_v8 = vsel %vm330_vm14, %v314_v39, %v317_v36  ;;  %v336_v42 = vsel %vm332_vm15, %v320_v35, %v335_v62 }
  0x5a   :  { %v255_v3 = vshll.u32 %v940_v58, 30  ;;  %v344_v63 = vsel %vm332_vm15, %v326_v45, %v343_v4  ;;  %v153_v9 = vsub.s32 0, %v945_v61  ;;  %vm413_vm3 = vcmp.gt.s32.totalorder %v412_v0, 0 }
  0x5b   :  { %v345_v12 = vsel %vm331_vm2, %v342_v2, %v344_v63  ;;  %v337_v18 = vsel %vm331_vm2, %v334_v8, %v336_v42  ;;  %v414_v19 = vsel %vm413_vm3, %v412_v0, 0  ;;  %v356_v23 = vadd.s32 1, %v951_v7 }
  0x5c   :  { %v959_v15 = vsub.s32 %v252_v49, %v255_v3  ;;  %v962_v20 = vmul.u32.u64.low %v346_v38, %v345_v12  ;;  %v963_v21 = vmul.u32.u64.high %v346_v38, %v345_v12, %v962_v20  ;;  %v617_v22 = vmin.u32 %v153_v9, %v945_v61 }
  0x5d   :  { %v353_v24 = vmul.u32 %v346_v38, %v337_v18  ;;  %v416_v25 = vand.u32 31, %v414_v19  ;;  %v402_v37 = vand.u32 2147483647, %v832_v34  ;;  %v415_v57 = vshrl.u32 %v414_v19, 5 }
  0x5e   :  { %v258_v41 = vsub.s32 0, %v959_v15  ;;  %vm355_vm4 = vc.u32 %v963_v21, %v950_v5  ;;  %v155_v31 = vclz %v617_v22  ;;  %v143_v20 = vadd.s32 %v874_v29, %v871_v28 }
  0x5f   :  { %v357_v30 = vsel %vm355_vm4, %v356_v23, %v951_v7  ;;  %v417_v33 = vsub.s32 32, %v416_v25  ;;  %v419_v45 = vshll.u32 %v759_v44, %v416_v25  ;;  %v422_v47 = vshll.u32 %v760_v46, %v416_v25 }
  0x60   :  { %v358_v54 = vadd.s32 %v357_v30, %v353_v24  ;;  %v621_v36 = vmin.u32 %v258_v41, %v959_v15  ;;  %v618_v35 = vadd.s32 4294967294, %v155_v31  ;;  %v428_v55 = vshll.u32 %v762_v50, %v416_v25 }
  0x61   :  { %v420_v51 = vshrl.u32 %v760_v46, %v417_v33  ;;  %v423_v53 = vshrl.u32 %v761_v48, %v417_v33  ;;  %v409_v38 = vand.u32 8388607, %v402_v37  ;;  %v429_v32 = vshrl.u32 %v763_v52, %v417_v33 }
  0x62   :  { %v359_v43 = vadd.s32 536870912, %v358_v54  ;;  %v260_v56 = vclz %v621_v36  ;;  %v425_v39 = vshll.u32 %v761_v48, %v416_v25  ;;  %v426_v59 = vshrl.u32 %v762_v50, %v417_v33 }
  0x63   :  { %vm619_vm5 = vcmp.lt.s32.totalorder %v618_v35, 0  ;;  %v431_v46 = vshll.u32 %v763_v52, %v416_v25  ;;  %v432_v62 = vshrl.u32 %v764_v60, %v417_v33  ;;  %v421_v1 = vor.u32 %v420_v51, %v419_v45 }
  0x64   :  { %v975_v49 = vshrl.u32 %v359_v43, 30  ;;  %v424_v2 = vor.u32 %v423_v53, %v422_v47  ;;  %v430_v3 = vor.u32 %v429_v32, %v428_v55  ;;  %v622_v4 = vadd.s32 4294967294, %v260_v56 }
  0x65   :  { %v410_v7 = vor.u32 8388608, %v409_v38  ;;  %vm434_vm6 = vcmp.lt.s32.totalorder %v415_v57, 1  ;;  %v158_v8 = vsel %vm619_vm5, 0, %v618_v35  ;;  %v418_v48 = vshrl.u32 %v759_v44, %v417_v33 }
  0x66   :  { %v361_v40 = vshll.u32 %v975_v49, 30  ;;  %v427_v63 = vor.u32 %v426_v59, %v425_v39  ;;  %v433_v50 = vor.u32 %v432_v62, %v431_v46  ;;  %vm435_vm7 = vcmp.lt.s32.totalorder %v415_v57, 2 }
  0x67   :  { %vm436_vm8 = vcmp.lt.s32.totalorder %v415_v57, 3  ;;  %vm437_vm9 = vcmp.lt.s32.totalorder %v415_v57, 4  ;;  %v442_v9 = vsel %vm434_vm6, %v421_v1, %v424_v2  ;;  %v163_v18 = vsub.s32 4294967266, %v158_v8 }
  0x68   :  { %v988_v0 = vsub.s32 %v358_v54, %v361_v40  ;;  %v439_v60 = vsel %vm437_vm9, %v427_v63, 2102212464  ;;  %v443_v12 = vsel %vm437_vm9, %v430_v3, 920167782  ;;  %vm623_vm10 = vcmp.lt.s32.totalorder %v622_v4, 0 }
  0x69   :  { %v450_v19 = vshll.u32 %v410_v7, 8  ;;  %v438_v44 = vsel %vm434_vm6, %v418_v48, %v421_v1  ;;  %v444_v23 = vsel %vm436_vm8, %v427_v63, %v443_v12  ;;  %v440_v24 = vsel %vm436_vm8, %v424_v2, %v439_v60 }
  0x6a   :  { %v364_v42 = vsub.s32 0, %v988_v0  ;;  %v445_v25 = vsel %vm435_vm7, %v442_v9, %v444_v23  ;;  %v446_v41 = vsel %vm434_vm6, %v424_v2, %v427_v63  ;;  %v447_v31 = vsel %vm437_vm9, %v433_v50, 1326507024 }
  0x6b   :  { %v159_v30 = vsub.s32 32, %v158_v8  ;;  %v263_v54 = vsel %vm623_vm10, 0, %v622_v4  ;;  %v448_v36 = vsel %vm436_vm8, %v430_v3, %v447_v31  ;;  %v164_v43 = vadd.s32 127, %v163_v18 }
  0x6c   :  { %v625_v52 = vmin.u32 %v364_v42, %v988_v0  ;;  %v449_v28 = vsel %vm435_vm7, %v446_v41, %v448_v36  ;;  %v1003_v29 = vmul.u32.u64.low %v450_v19, %v445_v25  ;;  %v1004_v35 = vmul.u32.u64.high %v450_v19, %v445_v25, %v1003_v29 }
  0x6d   :  { %v441_v45 = vsel %vm435_vm7, %v438_v44, %v440_v24  ;;  %v1007_v47 = vmul.u32.u64.low %v450_v19, %v449_v28  ;;  %v1008_v51 = vmul.u32.u64.high %v450_v19, %v449_v28, %v1007_v47  ;;  %v268_v53 = vsub.s32 4294967266, %v263_v54 }
  0x6e   :  { %v366_v22 = vclz %v625_v52  ;;  %v354_v38 = vadd.s32 %v950_v5, %v963_v21  ;;  %v457_v40 = vmul.u32 %v450_v19, %v441_v45  ;;  %v460_v39 = vadd.s32 1, %v1004_v35 }
  0x6f   :  { %v160_v59 = vshll.u32 %v945_v61, %v158_v8  ;;  %v161_v46 = vshrl.u32 %v143_v20, %v159_v30  ;;  %v165_v62 = vshll.u32 %v164_v43, 23  ;;  %v248_v57 = vadd.s32 %v901_v10, %v907_v17 }
  0x70   :  { %v626_v33 = vadd.s32 4294967294, %v366_v22  ;;  %v264_v2 = vsub.s32 32, %v263_v54  ;;  %v269_v3 = vadd.s32 127, %v268_v53  ;;  %vm459_vm12 = vc.u32 %v1008_v51, %v1003_v29 }
  0x71   :  { %v461_v4 = vsel %vm459_vm12, %v460_v39, %v1004_v35  ;;  %v162_v48 = vor.u32 %v161_v46, %v160_v59  ;;  %v166_v63 = vor.u32 4788187, %v165_v62  ;;  %v265_v61 = vshll.u32 %v959_v15, %v263_v54 }
  0x72   :  { %vm627_vm11 = vcmp.lt.s32.totalorder %v626_v33, 0  ;;  %v462_v42 = vadd.s32 %v461_v4, %v457_v40  ;;  %v266_v8 = vshrl.u32 %v248_v57, %v264_v2  ;;  %v270_v50 = vshll.u32 %v269_v3, 23 }
  0x73   :  { %v369_v55 = vsel %vm627_vm11, 0, %v626_v33  ;;  %v169_v9 = vcvt.s32.f32 %v162_v48  ;;  %v167_v12 = vand.u32 2147483647, %v166_v63  ;;  %vm89_vm13 = vcmp.lt.s32.totalorder %v814_v11, 0 }
  0x74   :  { %v374_v56 = vsub.s32 4294967266, %v369_v55  ;;  %v370_v32 = vsub.s32 32, %v369_v55  ;;  %v371_v5 = vshll.u32 %v988_v0, %v369_v55  ;;  %v463_v52 = vadd.s32 536870912, %v462_v42 }
  0x75   :  { %v267_v18 = vor.u32 %v266_v8, %v265_v61  ;;  %v271_v19 = vor.u32 4788187, %v270_v50  ;;  %v170_v23 = vmul.f32 %v169_v9, %v167_v12  ;;  %vm1026_vm14 = vcmp.le.f32.partialorder %v87_v14, 0.7853982 }
  0x76   :  { %v375_v1 = vadd.s32 127, %v374_v56  ;;  %v372_v21 = vshrl.u32 %v354_v38, %v370_v32  ;;  %v1020_v17 = vshrl.u32 %v463_v52, 30  ;;  %vm300_vm15 = vcmp.lt.s32.totalorder %v811_v6, 0 }
  0x77   :  { %v272_v24 = vand.u32 2147483647, %v271_v19  ;;  %v274_v25 = vcvt.s32.f32 %v267_v18  ;;  %v171_v30 = vxor.u32 2147483648, %v170_v23  ;;  %v458_v47 = vadd.s32 %v1003_v29, %v1008_v51 }
  0x78   :  { %v376_v7 = vshll.u32 %v375_v1, 23  ;;  %v373_v60 = vor.u32 %v372_v21, %v371_v5  ;;  %v465_v0 = vshll.u32 %v1020_v17, 30  ;;  %vm194_vm2 = vcmp.lt.s32.totalorder %v816_v13, 0 }
  0x79   :  { %v275_v54 = vmul.f32 %v274_v25, %v272_v24  ;;  %v172_v35 = vsel %vm89_vm13, %v171_v30, %v170_v23  ;;  %vm1037_vm3 = vcmp.le.f32.partialorder %v298_v27, 0.7853982  ;;  %vm1048_vm4 = vcmp.le.f32.partialorder %v192_v16, 0.7853982 }
  0x7a   :  { %v377_v10 = vor.u32 4788187, %v376_v7  ;;  %v380_v22 = vcvt.s32.f32 %v373_v60  ;;  %v466_v44 = vsub.s32 %v462_v42, %v465_v0  ;;  %v175_v29 = vsel %vm1026_vm14, %v814_v11, %v172_v35 }
  0x7b   :  { %v276_v45 = vxor.u32 2147483648, %v275_v54  ;;  %v173_v59 = vsub.s32 4, %v927_v26  ;;  %662 = vcosq.f32 %v175_v29  ;;  %v278_v16 = vsub.s32 4, %v940_v58 }
  0x7c   :  { %v378_v20 = vand.u32 2147483647, %v377_v10  ;;  %v468_v15 = vsub.s32 0, %v466_v44  ;;  %664 = vsinq.f32 %v175_v29  ;;  %v384_v5 = vsub.s32 4, %v975_v49 }
  0x7d   :  { %v277_v27 = vsel %vm194_vm2, %v276_v45, %v275_v54  ;;  %v174_v4 = vsel %vm89_vm13, %v173_v59, %v927_v26  ;;  %v279_v7 = vsel %vm194_vm2, %v278_v16, %v940_v58  ;;  %vm404_vm5 = vcmp.lt.s32.totalorder %v832_v34, 0 }
  0x7e   :  { %v381_v41 = vmul.f32 %v380_v22, %v378_v20  ;;  %v629_v31 = vmin.u32 %v468_v15, %v466_v44  ;;  %v280_v57 = vsel %vm1048_vm4, %v816_v13, %v277_v27  ;;  %v176_v42 = vsel %vm1026_vm14, 0, %v174_v4 }
  0x7f   :  { %v385_v63 = vsel %vm300_vm15, %v384_v5, %v975_v49  ;;  %v281_v26 = vsel %vm1048_vm4, 0, %v279_v7  ;;  %vm1079_vm6 = vcmp.le.f32.partialorder %v402_v37, 0.7853982  ;;  %v488_v8 = vsub.s32 4, %v1020_v17 }
  0x80   :  { %v470_v33 = vclz %v629_v31  ;;  %v382_v36 = vxor.u32 2147483648, %v381_v41  ;;  %v180_v50 = vadd.s32 3, %v176_v42  ;;  %v387_v60 = vsel %vm1037_vm3, 0, %v385_v63 }
  0x81   :  { %v285_v9 = vadd.s32 3, %v281_v26  ;;  %v489_v37 = vsel %vm404_vm5, %v488_v8, %v1020_v17  ;;  %v391_v20 = vand.u32 3, %v387_v60  ;;  %vm390_vm2 = vweird.f32 %v811_v6 }
  0x82   :  { %v630_v43 = vadd.s32 4294967294, %v470_v33  ;;  %v383_v55 = vsel %vm300_vm15, %v382_v36, %v381_v41  ;;  %v181_v0 = vand.u32 3, %v180_v50  ;;  %v491_v24 = vsel %vm1079_vm6, 0, %v489_v37 }
  0x83   :  { %v386_v46 = vsel %vm1037_vm3, %v811_v6, %v383_v55  ;;  %v286_v23 = vand.u32 3, %v285_v9  ;;  %vm393_vm8 = vcmp.eq.s32.totalorder %v391_v20, 0  ;;  %vm396_vm9 = vcmp.eq.s32.totalorder %v391_v20, 2 }
  0x84   :  { %vm631_vm1 = vcmp.lt.s32.totalorder %v630_v43, 0  ;;  %666 = vcosq.f32 %v386_v46  ;;  %vm186_vm7 = vcmp.eq.s32.totalorder %v181_v0, 2  ;;  %v495_v54 = vand.u32 3, %v491_v24 }
  0x85   :  { %v473_v14 = vsel %vm631_vm1, 0, %v630_v43  ;;  %668 = vsinq.f32 %v386_v46  ;;  %v663_v52 = vpop.eup %662  ;;  %vm183_vm10 = vcmp.eq.s32.totalorder %v181_v0, 0  ;;  %vm288_vm11 = vcmp.eq.s32.totalorder %v286_v23, 0 }
  0x86   :  { %v474_v56 = vsub.s32 32, %v473_v14  ;;  %v475_v38 = vshll.u32 %v466_v44, %v473_v14  ;;  %v478_v32 = vsub.s32 4294967266, %v473_v14  ;;  %670 = vcosq.f32 %v280_v57  ;;  %v665_v10 = vpop.eup %664 }
  0x87   :  { %672 = vsinq.f32 %v280_v57  ;;  %v187_v41 = vxor.u32 2147483648, %v663_v52  ;;  %v184_v31 = vxor.u32 2147483648, %v665_v10  ;;  %vm291_vm12 = vcmp.eq.s32.totalorder %v286_v23, 2 }
  0x88   :  { %v476_v40 = vshrl.u32 %v458_v47, %v474_v56  ;;  %v479_v39 = vadd.s32 127, %v478_v32  ;;  %vm392_vm13 = vcmp.lt.s32.totalorder %v391_v20, 2  ;;  %vm182_vm14 = vcmp.lt.s32.totalorder %v181_v0, 2 }
  0x89   :  { %v188_v43 = vsel %vm186_vm7, %v187_v41, %v665_v10  ;;  %vm287_vm15 = vcmp.lt.s32.totalorder %v286_v23, 2  ;;  %v185_v35 = vsel %vm183_vm10, %v663_v52, %v184_v31  ;;  %vm500_vm1 = vcmp.eq.s32.totalorder %v495_v54, 2 }
  0x8a   :  { %v477_v62 = vor.u32 %v476_v40, %v475_v38  ;;  %v480_v1 = vshll.u32 %v479_v39, 23  ;;  %vm497_vm3 = vcmp.eq.s32.totalorder %v495_v54, 0  ;;  %vm179_vm4 = vweird.f32 %v814_v11 }
  0x8b   :  { %v189_v38 = vsel %vm182_vm14, %v185_v35, %v188_v43  ;;  %vm494_vm7 = vweird.f32 %v832_v34 }
  0x8c   :  { %v481_v2 = vor.u32 4788187, %v480_v1  ;;  %v484_v3 = vcvt.s32.f32 %v477_v62  ;;  %v190_v6 = vsel %vm179_vm4, nan, %v189_v38 }
  0x8d   :  { %v296_v62 = vmul.f32 %v190_v6, %v190_v6 }
  0x8e   :  { %v482_v21 = vand.u32 2147483647, %v481_v2  ;;  %v667_v18 = vpop.eup %666 }
  0x8f   :  { %v669_v19 = vpop.eup %668  ;;  %v397_v15 = vxor.u32 2147483648, %v667_v18 }
  0x90   :  { %v485_v48 = vmul.f32 %v484_v3, %v482_v21  ;;  %v671_v22 = vpop.eup %670  ;;  %v394_v25 = vxor.u32 2147483648, %v669_v19 }
  0x91   :  { %v673_v44 = vpop.eup %672  ;;  %v292_v17 = vxor.u32 2147483648, %v671_v22  ;;  %v398_v36 = vsel %vm396_vm9, %v397_v15, %v669_v19  ;;  %v548_v19 = vlaneseq }
  0x92   :  { %v486_v58 = vxor.u32 2147483648, %v485_v48  ;;  %v289_v30 = vxor.u32 2147483648, %v673_v44  ;;  %v395_v33 = vsel %vm393_vm8, %v667_v18, %v394_v25  ;;  %v545_v25 = vld [vmem:[%s1117_s2] sm:$0xf] }
  0x93   :  { %v293_v47 = vsel %vm291_vm12, %v292_v17, %v673_v44  ;;  %v399_v14 = vsel %vm392_vm13, %v395_v33, %v398_v36  ;;  %v549_v44 = vshrl.u32 %v548_v19, 7  ;;  %vm568_vm12 = vcmask 1040384  }
  0x94   :  { %v487_v49 = vsel %vm404_vm5, %v486_v58, %v485_v48  ;;  %v290_v45 = vsel %vm288_vm11, %v671_v22, %v289_v30  ;;  %vm284_vm5 = vweird.f32 %v816_v13  ;;  %v400_v51 = vsel %vm390_vm2, nan, %v399_v14 }
  0x95   :  { %v490_v12 = vsel %vm1079_vm6, %v832_v34, %v487_v49  ;;  %vm496_vm6 = vcmp.lt.s32.totalorder %v495_v54, 2  ;;  %v294_v32 = vsel %vm287_vm15, %v290_v45, %v293_v47  ;;  %v550_v15 = vsub.s32 0, %v549_v44 }
  0x96   :  { %674 = vcosq.f32 %v490_v12  ;;  %v295_v39 = vsel %vm284_vm5, nan, %v294_v32  ;;  %v554_v31 = vsub.s32 1, %v549_v44  ;;  %v558_v30 = vsub.s32 2, %v549_v44 }
  0x97   :  { %676 = vsinq.f32 %v490_v12  ;;  %v562_v17 = vsub.s32 3, %v549_v44 }
  0xa0   :  { %v675_v28 = vpop.eup %674 }
  0xa1   :  { %v677_v53 = vpop.eup %676  ;;  %v501_v55 = vxor.u32 2147483648, %v675_v28 }
  0xa2   :  { %v498_v56 = vxor.u32 2147483648, %v677_v53 }
  0xa3   :  { %v502_v29 = vsel %vm500_vm1, %v501_v55, %v677_v53 }
  0xa4   :  { %v499_v27 = vsel %vm497_vm3, %v675_v28, %v498_v56 }
  0xa5   :  { %v503_v40 = vsel %vm496_vm6, %v499_v27, %v502_v29 }
  0xa6   :  { %v504_v59 = vsel %vm494_vm7, nan, %v503_v40 }
  0xa7   :  { %v505_v46 = vmul.f32 %v504_v59, %v400_v51 }
  0xa9   :  { %v506_v11 = vmul.f32 %v505_v46, %v295_v39 }
  0xab   :  { %v507_v1 = vmul.f32 %v506_v11, %v295_v39  ;;  %v544_v39 = vld [vmem:[#allocation2] sm:$0x1] }
  0xad   :  { %v508_v13 = vadd.f32 %v507_v1, %v296_v62 }
  0xaf   :  { %v509_v16 = vmax.f32 %v508_v13, 0.0 }
  0xb1   :  { %v510_v57 = vmin.f32 %v509_v16, 1.0 }
  0xb3   :  { %678 = vrsqrt.f32 %v510_v57  ;;  %vm513_vm8 = vcmp.eq.f32.partialorder %v510_v57, inf  ;;  %v516_v3 = vand.u32 2147483648, %v510_v57  ;;  %vm515_vm9 = vcmp.eq.f32.partialorder %v510_v57, 0.0 }
  0xbd   :  { %v679_v2 = vpop.eup %678 }
  0xbe   :  { %v512_v4 = vmul.f32 %v679_v2, %v510_v57 }
  0xc0   :  { %v514_v34 = vsel %vm513_vm8, %v510_v57, %v512_v4 }
  0xc1   :  { %v517_v5 = vsel %vm515_vm9, %v516_v3, %v514_v34 }
  0xc2   :  { %v518_v21 = vmul.f32 -0.0012624911, %v517_v5  ;;  %v532_v7 = vsub.f32 1.0, %v517_v5 }
  0xc4   :  { %v519_v42 = vadd.f32 0.00667009, %v518_v21  ;;  %v533_v48 = vmax.f32 %v532_v7, 0.0 }
  0xc6   :  { %v520_v63 = vmul.f32 %v519_v42, %v517_v5  ;;  %680 = vrsqrt.f32 %v533_v48  ;;  %vm536_vm10 = vcmp.eq.f32.partialorder %v533_v48, inf  ;;  %v539_v12 = vand.u32 2147483648, %v533_v48 }
  0xc7   :  { %vm538_vm11 = vcmp.eq.f32.partialorder %v533_v48, 0.0 }
  0xc8   :  { %v521_v26 = vadd.f32 -0.017088126, %v520_v63 }
  0xca   :  { %v522_v61 = vmul.f32 %v521_v26, %v517_v5 }
  0xcc   :  { %v523_v58 = vadd.f32 0.03089188, %v522_v61 }
  0xce   :  { %v524_v8 = vmul.f32 %v523_v58, %v517_v5 }
  0xd0   :  { %v525_v50 = vadd.f32 -0.050174303, %v524_v8  ;;  %v681_v52 = vpop.eup %680 }
  0xd1   :  { %v535_v10 = vmul.f32 %v681_v52, %v533_v48 }
  0xd2   :  { %v526_v60 = vmul.f32 %v525_v50, %v517_v5 }
  0xd3   :  { %v537_v37 = vsel %vm536_vm10, %v533_v48, %v535_v10 }
  0xd4   :  { %v527_v49 = vadd.f32 0.08897899, %v526_v60  ;;  %v540_v20 = vsel %vm538_vm11, %v539_v12, %v537_v37 }
  0xd6   :  { %v528_v9 = vmul.f32 %v527_v49, %v517_v5 }
  0xd8   :  { %v529_v18 = vadd.f32 -0.2145988, %v528_v9 }
  0xda   :  { %v530_v0 = vmul.f32 %v529_v18, %v517_v5 }
  0xdc   :  { %v531_v22 = vadd.f32 1.5707963, %v530_v0 }
  0xde   :  { %v541_v23 = vmul.f32 %v540_v20, %v531_v22 }
  0xe0   :  { %v542_v24 = vsub.f32 1.5707964, %v541_v23 }
  0xe2   :  { %v543_v41 = vmul.f32 12742.0, %v542_v24 }
  0xe4   :  { %v546_v54 = vmul.f32 %v545_v25, %v543_v41 }
  0xe6   :  { %v551_v33 = vrot.slane %v546_v54, %v550_v15  ;;  %v555_v36 = vrot.slane %v546_v54, %v554_v31  ;;  %v559_v43 = vrot.slane %v546_v54, %v558_v30  ;;  %v563_v28 = vrot.slane %v546_v54, %v562_v17 }
  0xe8   :  { %v569_v35 = vsel %vm568_vm12, %v551_v33, 0.0  ;;  %v570_v45 = vsel %vm568_vm12, %v555_v36, 0.0  ;;  %v572_v47 = vsel %vm568_vm12, %v559_v43, 0.0  ;;  %v574_v14 = vsel %vm568_vm12, %v563_v28, 0.0 }
  0xe9   :  { %v571_v53 = vadd.f32 %v570_v45, %v569_v35 }
  0xeb   :  { %v573_v55 = vadd.f32 %v572_v47, %v571_v53 }
  0xed   :  { %v575_v56 = vadd.f32 %v574_v14, %v573_v55 }
  0xef   :  { %576 = vadd.xlane.f32.xlu0 %v575_v56 }
 0x17c   :  { %v577_v38 = vpop.xlane.xlu0 %576 }
 0x17d   :  { %v578_v32 = vrot.slane %v577_v38, 4 }
 0x17f   :  { %v579_v29 = vadd.f32 %v578_v32, %v577_v38 }
 0x181   :  { %v580_v51 = vrot.slane %v579_v29, 2 }
 0x183   :  { %v581_v27 = vadd.f32 %v580_v51, %v579_v29 }
 0x185   :  { %v582_v40 = vrot.slane %v581_v27, 1 }
 0x187   :  { %v583_v6 = vadd.f32 %v582_v40, %v581_v27 }
 0x189   :  { %648 = vpush %v583_v6 }
 0x1ba   :  { %s649_s2 = spop %648 }
 0x1bb   :  { %v585_v59 = vstv %s649_s2 }
 0x1bc   :  { %v586_v46 = vadd.f32 %v585_v59, %v544_v39 }
 0x1be   :  { %588 = vst.msk [vmem:[#allocation2] sm:$0x1] %vm74_vm0, %v586_v46 }
 0x1c5   :  { %v592_v62 = vld [vmem:[#allocation2] sm:$0x1] }
 0x1c6   :  { %593 = vst.msk [vmem:[#allocation8] sm:$0x1] %vm74_vm0, %v592_v62 }
 0x1c7   :  { %737 = shalt.err (!%p734_p6)
}
 0x1c8   :  { %s738_s17 = scalar_lea.hbm %s1118_s3, 16 }
 0x1c9   :  { %p739_p7 = scmp.ne.s32.totalorder %s1118_s3, %s738_s17  ;;  %p742_p8 = scmp.lt.u32.totalorder %s738_s17, %s1118_s3 }
 0x1cb   :  { %p744_p9 = pnand %p742_p8, %p739_p7 }
 0x1cd   :  { %747 = shalt.err (!%p744_p9)
}
 0x1ce   :  { %603 = dma.vmem_to_hbm [thread:$0]  %s601_s12, 16, %s1118_s3, [#allocation5]  }
 0x1cf   :  { %752 = dma.done.wait [#allocation5], 16  }
 0x1d0   :  { %753 = vsyncadd [#allocation5], 4294967280 }
 0x1d1   :  { %607 = vsyncpa [#allocation4], 1 }
 0x1d2   :  { %608 = vsyncpa [#allocation7], 1 }
 0x1d3   :  { %609 = vsyncpa [#allocation5], 1 }

</bundles_post_ra>
